<compile_context>
chip_gen: v7x
topology: tpu7x:2x2x1
jax: 0.10.0
libtpu: 0.0.40
codegen_flags: <defaults>
</compile_context>

<pallas_src>
import functools

import jax
import jax.numpy as jnp
from jax.experimental import pallas as pl
from jax.experimental.pallas import tpu as pltpu


def _nonlocal_kernel(exp_dtype, u_ref, a_ref, g_ref, wo_ref, bo_ref, out_ref):
    # u_ref:   (1, C+1, TQ)  pooled input tile + ones row, channels-first, bf16
    # a_ref:   (1, N, C+1)   per-batch [phi@w_theta^T , phi@b_theta^T], bf16
    # g_ref:   (1, c2+1, N)  per-batch [g_x^T ; ones], bf16
    # wo_ref:  (C, c2)       w_out^T, bf16
    # bo_ref:  (C, 1)        b_out as a column, f32
    # out_ref: (1, C, TQ)    output tile, channels-first (lane-dense store)
    f32, bf16 = jnp.float32, jnp.bfloat16
    C, c2 = wo_ref.shape

    u = u_ref[0]    # (C+1, TQ)
    a = a_ref[0]    # (N, C+1)
    g = g_ref[0]    # (c2+1, N)

    # scores^T = phi_x^T @ theta_x^T (theta weights + bias folded into a/u):
    # (N, TQ), f32 MXU accumulation.
    s_t = jnp.dot(a, u, preferred_element_type=f32)

    # Numerically-stable unnormalized softmax numerator (softmax axis = N,
    # the sublane axis).  bf16 exp on v6e/v7x (EUP bf16 path), f32 elsewhere.
    m = jnp.max(s_t, axis=0, keepdims=True)
    e = jnp.exp((s_t - m).astype(exp_dtype)).astype(bf16)   # (N, TQ)

    # y_aug = [g_x^T ; ones] @ e : rows 0..c2-1 = unnormalized y^T,
    # row c2 = softmax denominator (computed on the MXU for free).
    y_aug = jnp.dot(g, e, preferred_element_type=f32)        # (c2+1, TQ)
    denom = y_aug[c2:c2 + 1, :]                              # (1, TQ)
    y_t = y_aug[0:c2, :] * pl.reciprocal(denom)              # exact; tiny vector

    # out^T = w_out^T @ y^T + b_out : (C, TQ), lane-dense store.
    out_t = jnp.dot(wo_ref[...], y_t.astype(bf16),
                    preferred_element_type=f32) + bo_ref[...]
    out_ref[0] = out_t.astype(out_ref.dtype)


def _use_bf16_exp():
    """bf16 EUP exists on v6e / v7x; fall back to f32 exp elsewhere."""
    try:
        kind = jax.devices()[0].device_kind.lower()
    except Exception:  # pragma: no cover - defensive
        return False
    return ("v6" in kind) or ("v7" in kind) or ("tpu7" in kind)


def _pick_block_q(HW, N, batch):
    """Largest lane-dense query tile whose f32 (N, block_q) intermediates fit
    a conservative VMEM budget; also ensures >=2 grid programs when possible
    so the parallel axes can be sharded across both v7x TensorCores."""
    budget = 12 * 1024 * 1024                      # bytes for ~3 f32 (N, bq) arrays
    cap = max(128, budget // (3 * 4 * max(N, 1)))
    bq = None
    cand = 128
    while cand <= min(HW, 512):
        if HW % cand == 0 and cand <= cap:
            bq = cand
        cand += 128
    if bq is None:
        bq = HW                                    # small / awkward HW: one tile
    while batch * (HW // bq) < 2 and bq % 256 == 0:
        bq //= 2                                   # keep the halves lane-dense
    return bq


def nonlocal_block_pallas(x, params, avg_kernel=2):
    """x: (b, C, H, W) float32 (NCHW). Returns (b, C, H, W) float32."""
    b, C, H, W = x.shape
    c2 = params["w_theta"].shape[1]
    # TODO(synk): assumes H, W divisible by avg_kernel and h, w divisible by 4
    # (AvgPool floor semantics for odd sizes not reproduced).
    h, w = H // avg_kernel, W // avg_kernel
    h4, w4 = h // 4, w // 4
    HW, N = h * w, h4 * w4

    f32, bf16 = jnp.float32, jnp.bfloat16
    xf = x.astype(f32)

    # self.avg: AvgPool2d(avg_kernel, stride=avg_kernel), channels-first.
    u = xf.reshape(b, C, h, avg_kernel, w, avg_kernel).mean(axis=(3, 5))     # (b, C, h, w)
    # upsample(): AvgPool2d(4, 4) then flatten. The 1x1 convs + bias are linear
    # per-pixel, so pooling commutes with them exactly: pool u once here.
    u4 = u.reshape(b, C, h4, 4, w4, 4).mean(axis=(3, 5)).reshape(b, C, N)    # (b, C, N)

    # Per-batch hoisted projections (tiny tensors, exact f32 host math):
    #   phi_f  = u4^T @ w_phi + b_phi                       : (b, N, c2)
    #   a_aug  = [phi_f @ w_theta^T , phi_f @ b_theta^T]    : (b, N, C+1)
    #   g_aug  = [w_g^T @ u4 + b_g^T ; ones]                : (b, c2+1, N)
    u4t = u4.transpose(0, 2, 1)                                              # (b, N, C)
    phi_f = u4t @ params["w_phi"] + params["b_phi"]                          # (b, N, c2)
    a_aug = jnp.concatenate(
        [phi_f @ params["w_theta"].T, phi_f @ params["b_theta"].T], axis=2)  # (b, N, C+1)
    g_t = jnp.einsum("co,bcn->bon", params["w_g"], u4) + params["b_g"].T[None]
    g_aug = jnp.concatenate([g_t, jnp.ones((b, 1, N), f32)], axis=1)         # (b, c2+1, N)

    # Query input: pooled x, channels-first, with a trailing ones row so the
    # theta bias rides the scores matmul (a_aug @ u_aug).
    u_cf = u.reshape(b, C, HW)
    u_aug = jnp.concatenate([u_cf, jnp.ones((b, 1, HW), f32)],
                            axis=1).astype(bf16)                             # (b, C+1, HW)
    a_aug = a_aug.astype(bf16)
    g_aug = g_aug.astype(bf16)
    wo_t = params["w_out"].T.astype(bf16)                                    # (C, c2)
    bo = params["b_out"].T.astype(f32)                                       # (C, 1)

    block_q = _pick_block_q(HW, N, b)
    n_q = HW // block_q

    # Conservative VMEM estimate -> explicit limit (safe on v5e/v6e/v7x).
    est = (3 * 4 * N * block_q                              # f32 score/exp blocks
           + 2 * 2 * (C + 1) * block_q                      # dbl-buffered bf16 u tile
           + 2 * 4 * C * block_q                            # dbl-buffered f32 out tile
           + 2 * 2 * (N * (C + 1) + (c2 + 1) * N)           # per-batch constants
           + (1 << 20))                                     # weights + slack
    vmem_limit = int(min(max(2 * est, 32 * 1024 * 1024), 48 * 1024 * 1024))

    exp_dtype = bf16 if _use_bf16_exp() else f32
    kernel = functools.partial(_nonlocal_kernel, exp_dtype)

    full = lambda shape: pl.BlockSpec(shape, lambda i, j: (0, 0))
    out_flat = pl.pallas_call(
        kernel,
        out_shape=jax.ShapeDtypeStruct((b, C, HW), f32),
        grid_spec=pltpu.PrefetchScalarGridSpec(
            num_scalar_prefetch=0,
            grid=(b, n_q),
            in_specs=[
                pl.BlockSpec((1, C + 1, block_q), lambda i, j: (i, 0, j)),
                pl.BlockSpec((1, N, C + 1), lambda i, j: (i, 0, 0)),
                pl.BlockSpec((1, c2 + 1, N), lambda i, j: (i, 0, 0)),
                full((C, c2)),
                full((C, 1)),
            ],
            out_specs=pl.BlockSpec((1, C, block_q), lambda i, j: (i, 0, j)),
        ),
        compiler_params=pltpu.CompilerParams(
            dimension_semantics=("parallel", "parallel"),
            vmem_limit_bytes=vmem_limit),
    )(u_aug, a_aug, g_aug, wo_t, bo)

    # F.interpolate(size=[H, W]) nearest with integer scale H/h == avg_kernel:
    # exact broadcast+reshape (no gathers, no extra HBM intermediates).
    k = avg_kernel
    y = out_flat.reshape(b, C, h, 1, w, 1)
    y = jnp.broadcast_to(y, (b, C, h, k, w, k)).reshape(b, C, H, W)
    return y


def _reference_jax(x, params, avg_kernel=2):
    """Pure-JAX f32 reference mirroring the PyTorch forward exactly."""
    b, C, H, W = x.shape
    c2 = params["w_theta"].shape[1]
    h, w = H // avg_kernel, W // avg_kernel
    u = x.reshape(b, C, h, avg_kernel, w, avg_kernel).mean(axis=(3, 5))

    def conv1x1(t, wmat, bias):  # t: (b,Cin,hh,ww), wmat: (Cin, Cout)
        bb, cc, hh, ww = t.shape
        tf = t.reshape(bb, cc, hh * ww).transpose(0, 2, 1)
        o = tf @ wmat + bias
        return o.transpose(0, 2, 1).reshape(bb, wmat.shape[1], hh, ww)

    def up(t):  # AvgPool2d(4,4) then view (b,c,-1)
        bb, cc, hh, ww = t.shape
        p = t.reshape(bb, cc, hh // 4, 4, ww // 4, 4).mean(axis=(3, 5))
        return p.reshape(bb, cc, -1)

    theta_x = conv1x1(u, params["w_theta"], params["b_theta"]).reshape(b, c2, -1).transpose(0, 2, 1)
    phi_x = up(conv1x1(u, params["w_phi"], params["b_phi"]))
    g_x = up(conv1x1(u, params["w_g"], params["b_g"])).transpose(0, 2, 1)
    s = jax.nn.softmax(theta_x @ phi_x, axis=-1)
    y = (s @ g_x).transpose(0, 2, 1).reshape(b, c2, h, w)
    y = conv1x1(y, params["w_out"], params["b_out"])
    hi = (jnp.arange(H) * h) // H
    wi = (jnp.arange(W) * w) // W
    return y[:, :, hi, :][:, :, :, wi]


if __name__ == "__main__":
    channel = 32           # module default
    c2 = channel // 2
    b, H, W = 2, 32, 32    # small; h=w=16 -> HW=256 (lane-dense), N=16

    key = jax.random.PRNGKey(0)
    ks = jax.random.split(key, 9)
    x = jax.random.normal(ks[0], (b, channel, H, W), dtype=jnp.float32)

    # Conv2d(Cin, Cout, 1) represented as (Cin, Cout) matmul weight + (1, Cout) bias.
    params = {
        "w_theta": 0.25 * jax.random.normal(ks[1], (channel, c2), dtype=jnp.float32),
        "b_theta": 0.1 * jax.random.normal(ks[2], (1, c2), dtype=jnp.float32),
        "w_phi": 0.25 * jax.random.normal(ks[3], (channel, c2), dtype=jnp.float32),
        "b_phi": 0.1 * jax.random.normal(ks[4], (1, c2), dtype=jnp.float32),
        "w_g": 0.25 * jax.random.normal(ks[5], (channel, c2), dtype=jnp.float32),
        "b_g": 0.1 * jax.random.normal(ks[6], (1, c2), dtype=jnp.float32),
        "w_out": 0.25 * jax.random.normal(ks[7], (c2, channel), dtype=jnp.float32),
        "b_out": 0.1 * jax.random.normal(ks[8], (1, channel), dtype=jnp.float32),
    }

    out = nonlocal_block_pallas(x, params)
    out = jax.block_until_ready(out)
    assert out.shape == (b, channel, H, W), out.shape

    ref = _reference_jax(x, params)
    max_err = float(jnp.max(jnp.abs(out - ref)))
    # bf16 MXU operands (+ bf16 exp on v6e/v7x) -> relaxed but meaningful tol.
    assert jnp.allclose(out, ref, atol=3e-2, rtol=3e-2), max_err

    print("KERNEL_OK")
</pallas_src>

<mosaic_0001>
module attributes {stable_mosaic.version = 11 : i64} {
  func.func @_nonlocal_kernel(%arg0: i32, %arg1: i32, %arg2: memref<1x33x256xbf16, #tpu.memory_space<vmem>>, %arg3: memref<1x16x33xbf16, #tpu.memory_space<vmem>>, %arg4: memref<1x17x16xbf16, #tpu.memory_space<vmem>>, %arg5: memref<32x16xbf16, #tpu.memory_space<vmem>>, %arg6: memref<32x1xf32, #tpu.memory_space<vmem>>, %arg7: memref<1x32x256xf32, #tpu.memory_space<vmem>>) attributes {dimension_semantics = [#tpu.dimension_semantics<parallel>, #tpu.dimension_semantics<parallel>], iteration_bounds = array<i64: 2, 1>, scalar_prefetch = 0 : i64, scratch_operands = 0 : i64, tpu.core_type = #tpu.core_type<tc>, window_params = [{transform_indices = @transform_0, window_bounds = array<i64: 1, 33, 256>}, {transform_indices = @transform_1, window_bounds = array<i64: 1, 16, 33>}, {transform_indices = @transform_2, window_bounds = array<i64: 1, 17, 16>}, {pipeline_mode = #tpu.pipeline_mode<synchronous>, transform_indices = @transform_3, window_bounds = array<i64: 32, 16>}, {pipeline_mode = #tpu.pipeline_mode<synchronous>, transform_indices = @transform_4, window_bounds = array<i64: 32, 1>}, {transform_indices = @transform_5, window_bounds = array<i64: 1, 32, 256>}]} {
    %c0 = arith.constant 0 : index
    %c0_0 = arith.constant 0 : index
    %c0_1 = arith.constant 0 : index
    %0 = vector.load %arg2[%c0, %c0_0, %c0_1] : memref<1x33x256xbf16, #tpu.memory_space<vmem>>, vector<1x33x256xbf16>
    %1 = vector.shape_cast %0 : vector<1x33x256xbf16> to vector<33x256xbf16>
    %c0_2 = arith.constant 0 : index
    %c0_3 = arith.constant 0 : index
    %c0_4 = arith.constant 0 : index
    %2 = vector.load %arg3[%c0_2, %c0_3, %c0_4] : memref<1x16x33xbf16, #tpu.memory_space<vmem>>, vector<1x16x33xbf16>
    %3 = vector.shape_cast %2 : vector<1x16x33xbf16> to vector<16x33xbf16>
    %c0_5 = arith.constant 0 : index
    %c0_6 = arith.constant 0 : index
    %c0_7 = arith.constant 0 : index
    %4 = vector.load %arg4[%c0_5, %c0_6, %c0_7] : memref<1x17x16xbf16, #tpu.memory_space<vmem>>, vector<1x17x16xbf16>
    %5 = vector.shape_cast %4 : vector<1x17x16xbf16> to vector<17x16xbf16>
    %cst = arith.constant dense<0.000000e+00> : vector<16x256xf32>
    %6 = tpu.matmul %3, %1, %cst {dimension_numbers = #tpu.dot_dimension_numbers<[1], [0], [0], [1], [0, 0, 1, 1], [], []>} : vector<16x33xbf16>, vector<33x256xbf16>, vector<16x256xf32> -> vector<16x256xf32>
    %cst_8 = arith.constant dense<0xFF800000> : vector<256xf32>
    %7 = vector.multi_reduction <maximumf>, %6, %cst_8 [0] : vector<16x256xf32> to vector<256xf32>
    %8 = vector.shape_cast %7 : vector<256xf32> to vector<1x256xf32>
    %9 = vector.broadcast %8 : vector<1x256xf32> to vector<16x256xf32>
    %10 = arith.subf %6, %9 : vector<16x256xf32>
    %11 = math.exp %10 : vector<16x256xf32>
    %12 = arith.truncf %11 : vector<16x256xf32> to vector<16x256xbf16>
    %cst_9 = arith.constant dense<0.000000e+00> : vector<17x256xf32>
    %13 = tpu.matmul %5, %12, %cst_9 {dimension_numbers = #tpu.dot_dimension_numbers<[1], [0], [0], [1], [0, 0, 1, 1], [], []>} : vector<17x16xbf16>, vector<16x256xbf16>, vector<17x256xf32> -> vector<17x256xf32>
    %14 = vector.extract_strided_slice %13 {offsets = [16, 0], sizes = [1, 256], strides = [1, 1]} : vector<17x256xf32> to vector<1x256xf32>
    %15 = vector.extract_strided_slice %13 {offsets = [0, 0], sizes = [16, 256], strides = [1, 1]} : vector<17x256xf32> to vector<16x256xf32>
    %16 = tpu.reciprocal %14 : vector<1x256xf32> -> vector<1x256xf32>
    %17 = vector.broadcast %16 : vector<1x256xf32> to vector<16x256xf32>
    %18 = arith.mulf %15, %17 : vector<16x256xf32>
    %c0_10 = arith.constant 0 : index
    %c0_11 = arith.constant 0 : index
    %19 = vector.load %arg5[%c0_10, %c0_11] : memref<32x16xbf16, #tpu.memory_space<vmem>>, vector<32x16xbf16>
    %20 = arith.truncf %18 : vector<16x256xf32> to vector<16x256xbf16>
    %cst_12 = arith.constant dense<0.000000e+00> : vector<32x256xf32>
    %21 = tpu.matmul %19, %20, %cst_12 {dimension_numbers = #tpu.dot_dimension_numbers<[1], [0], [0], [1], [0, 0, 1, 1], [], []>} : vector<32x16xbf16>, vector<16x256xbf16>, vector<32x256xf32> -> vector<32x256xf32>
    %c0_13 = arith.constant 0 : index
    %c0_14 = arith.constant 0 : index
    %22 = vector.load %arg6[%c0_13, %c0_14] : memref<32x1xf32, #tpu.memory_space<vmem>>, vector<32x1xf32>
    %23 = vector.broadcast %22 : vector<32x1xf32> to vector<32x256xf32>
    %24 = arith.addf %21, %23 : vector<32x256xf32>
    %c0_15 = arith.constant 0 : index
    %c0_16 = arith.constant 0 : index
    %c0_17 = arith.constant 0 : index
    %25 = vector.load %arg7[%c0_15, %c0_16, %c0_17] : memref<1x32x256xf32, #tpu.memory_space<vmem>>, vector<1x32x256xf32>
    %26 = vector.shape_cast %25 : vector<1x32x256xf32> to vector<32x256xf32>
    %27 = vector.shape_cast %24 : vector<32x256xf32> to vector<1x32x256xf32>
    tpu.vector_store %arg7[%c0_15, %c0_16, %c0_17], %27 {strides = array<i32>} : memref<1x32x256xf32, #tpu.memory_space<vmem>>, vector<1x32x256xf32>,
    return
  }
  func.func @transform_0(%arg0: i32, %arg1: i32) -> (i32, i32, i32) {
    %c0_i32 = arith.constant 0 : i32
    %c0_i32_0 = arith.constant 0 : i32
    return %arg0, %c0_i32, %arg1 : i32, i32, i32
  }
  func.func @transform_1(%arg0: i32, %arg1: i32) -> (i32, i32, i32) {
    %c0_i32 = arith.constant 0 : i32
    %c0_i32_0 = arith.constant 0 : i32
    %c0_i32_1 = arith.constant 0 : i32
    return %arg0, %c0_i32, %c0_i32_0 : i32, i32, i32
  }
  func.func @transform_2(%arg0: i32, %arg1: i32) -> (i32, i32, i32) {
    %c0_i32 = arith.constant 0 : i32
    %c0_i32_0 = arith.constant 0 : i32
    %c0_i32_1 = arith.constant 0 : i32
    return %arg0, %c0_i32, %c0_i32_0 : i32, i32, i32
  }
  func.func @transform_3(%arg0: i32, %arg1: i32) -> (i32, i32) {
    %c0_i32 = arith.constant 0 : i32
    %c0_i32_0 = arith.constant 0 : i32
    %c0_i32_1 = arith.constant 0 : i32
    return %c0_i32, %c0_i32_0 : i32, i32
  }
  func.func @transform_4(%arg0: i32, %arg1: i32) -> (i32, i32) {
    %c0_i32 = arith.constant 0 : i32
    %c0_i32_0 = arith.constant 0 : i32
    %c0_i32_1 = arith.constant 0 : i32
    return %c0_i32, %c0_i32_0 : i32, i32
  }
  func.func @transform_5(%arg0: i32, %arg1: i32) -> (i32, i32, i32) {
    %c0_i32 = arith.constant 0 : i32
    %c0_i32_0 = arith.constant 0 : i32
    return %arg0, %c0_i32, %arg1 : i32, i32, i32
  }
}

</mosaic_0001>

<bundles_post_ra>
// kernel: tpu_custom_call.1
= control target key start
LH: loop header
LB: loop body
LE: loop exit
PB: predicated region body
PF: predicated region fallthrough
CT: control target
= control target key end

     0   :  { %10 = vsyncpa [#allocation3], 0  ;;  %s1125_s0 = inlined_call_operand.vmem [shape: bf16[2,33,256], index: 0, kind: input, shape index: {}]   ;;  %s1126_s1 = inlined_call_operand.vmem [shape: bf16[2,16,33], index: 1, kind: input, shape index: {}]   ;;  %s1127_s2 = inlined_call_operand.vmem [shape: bf16[2,17,16], index: 2, kind: input, shape index: {}]   ;;  %s1128_s3 = inlined_call_operand.vmem [shape: bf16[32,16], index: 3, kind: input, shape index: {}]   ;;  %s1129_s4 = inlined_call_operand.vmem [shape: f32[32,1], index: 4, kind: input, shape index: {}]   ;;  %s1130_s5 = inlined_call_operand.hbm [shape: f32[2,32,256], index: 5, kind: output, shape index: {}]  }
   0x1   :  { %12 = vsyncpa [#allocation3 + $0x1], 0  ;;  %s961_s18 = smov 0   ;;  %s963_s19 = smov 0  }
   0x2   :  { %s965_s20 = smov 0   ;;  %s967_s21 = smov 0  }
   0x3   :  { %s969_s22 = smov 0   ;;  %s971_s23 = smov 0  }
   0x4 LB: > { %s725_s24 = sadd.s32 4294967295, %s925_s23   ;;  %s726_s25 = sadd.s32 4294967294, %s925_s23   ;;  %s925_s23 = sphi %s971_s23, %s18_s23   ;;  %s921_s22 = sphi %s969_s22, %s1137_s22   ;;  %s917_s21 = sphi %s967_s21, %s1136_s21   ;;  %s913_s20 = sphi %s965_s20, %s1135_s20   ;;  %s909_s19 = sphi %s963_s19, %s1134_s19   ;;  %s905_s18 = sphi %s961_s18, %s1133_s18  }
   0x5   : > { %s30_s26 = sadd.s32 1, %s921_s22  ;;  %s161_s27 = sadd.s32 1, %s913_s20 }
   0x6   : > { %p32_p0 = scmp.ge.s32.totalorder %s30_s26, 2  ;;  %p171_p1 = scmp.ne.s32.totalorder %s913_s20, %s909_s19 }
   0x7   : > { %p172_p2 = scmp.eq.s32.totalorder %s725_s24, 1  ;;  %p177_p3 = scmp.ne.s32.totalorder %s909_s19, %s905_s18 }
   0x8   : > { %s1139_s26 = smov (%p32_p0, %s30_s26), 0  ;;  %p178_p5 = scmp.eq.s32.totalorder %s726_s25, 1 }
   0x9   : > { %p1001_p4 = por %p172_p2, %p171_p1  ;;  %s156_s29 = ssub.s32 %s921_s22, %s1139_s26 }
   0xa   : > { %p729_p6 = scmp.ge.s32.totalorder %s925_s23, 1  ;;  %p159_p7 = scmp.eq.s32.totalorder %s156_s29, 0 }
   0xb   : > { %p1008_p8 = por %p178_p5, %p177_p3  ;;  %p231_p9 = scmp.lt.s32.totalorder %s925_s23, 3 }
   0xc   : > { %s1014_s6 = scalar_select %p159_p7, %s913_s20, %s161_s27  }
   0xd   : > { %p232_p10 = pnand %p729_p6, %p231_p9 }
   0xe   : > { %p274_p11 = scmp.lt.s32.totalorder (!%p232_p10), %s917_s21, 1  ;;  %v927_v0 = vmov (!%p232_p10), 0   ;;  %vm339_vm0 = vcmask (!%p232_p10), 1040384   ;;  %vm335_vm1 = vcmask (!%p232_p10), 269312   ;;  %vm427_vm2 = vcmask (!%p232_p10), 130048   ;;  %v507_v46 = vld [vmem:[%s1129_s4 + $0x10] sm:$0xff] (!%p232_p10) }
   0xf   : > { %235 = sbr.rel (%p232_p10) target bundleno = 766 (0x2fe), region = 40  ;;  %380 = vmatprep.mubr.bf16.mxu0 (!%p232_p10), %v927_v0  ;;  %466 = vmatprep.mubr.bf16.mxu1 (!%p232_p10), %v927_v0  ;;  %v341_v5 = vsel (!%p232_p10), %vm339_vm0, 65535, %v927_v0  ;;  %v505_v47 = vld [vmem:[%s1129_s4] sm:$0xff] (!%p232_p10)  ;;  %v508_v48 = vld [vmem:[%s1129_s4 + $0x18] sm:$0xff] (!%p232_p10)  ;;  %v506_v49 = vld [vmem:[%s1129_s4 + $0x8] sm:$0xff] (!%p232_p10)  ;;  %v487_v55 = vlaneseq (!%p232_p10)  ;;  %s270_s17 = sand.u32 (!%p232_p10), 1, %s909_s19  }
  0x10   : > { %821 = vset.pattern.permute.xlu1 (!%p232_p10), %v927_v0  ;;  %820 = vset.pattern.permute.xlu0 (!%p232_p10), %v927_v0  ;;  %s730_s24 = sshll.u32 (!%p232_p10), %s270_s17, 6  ;;  %s928_s11 = smov (!%p232_p10), [#allocation2]  }
  0x11   : > { %521 = vperm.xlu1 (!%p232_p10), %821, %v507_v46   ;;  %511 = vperm.xlu0 (!%p232_p10), %820, %v505_v47   ;;  %v488_v59 = vshrl.u32 (!%p232_p10), %v487_v55, 7  ;;  %s272_s27 = scalar_lea.vmem (!%p232_p10), [#allocation2], %s730_s24 }
  0x12   : > { %s622_s29 = sshll.u32 (!%p232_p10), %s272_s27, 4  ;;  %s1075_s29 = int_to_ptr.vmem [resolvable:$true] %s622_s29 }
  0x13   : > { %v489_v60 = vsub.s32 (!%p232_p10), 0, %v488_v59  ;;  %s847_s10 = scalar_lea.vmem (!%p232_p10), %s1075_s29, 1024 }
  0x14   : > { %p848_p12 = scmp.ne.s32.totalorder (!%p232_p10), %s1075_s29, %s847_s10 }
  0x15   : > { %526 = vperm.xlu1 (!%p232_p10), %821, %v508_v48   ;;  %516 = vperm.xlu0 (!%p232_p10), %820, %v506_v49  }
  0x16   : > { %s1020_s7 = scalar_select %p274_p11, %s917_s21, 1 }
  0x17   : > { %p849_p13 = pnand %p848_p12, %p1001_p4 }
  0x18   : > { %s760_s8 = smul.u32 40, %s1020_s7  ;;  %s756_s9 = sshll.u32 %s1020_s7, 3 }
  0x19   : > { %s287_s12 = scalar_lea.vmem %s1126_s1, %s756_s9  ;;  %s761_s16 = smul.u32 12, %s1020_s7 }
  0x1a   : > { %s281_s15 = scalar_lea.vmem %s1125_s0, %s760_s8  ;;  %v830_v11 = vld [vmem:[%s287_s12] sm:$0xff]   ;;  %s1079_s9 = scalar_lea.sflag [#allocation3], %s270_s17 }
  0x1b   : > { %v822_v1 = vld [vmem:[%s281_s15 + $0x4] ss:$8 sps:$4 sm:$0xff]   ;;  %v824_v2 = vld [vmem:[%s281_s15] ss:$8 sps:$4 sm:$0xff]   ;;  %v825_v3 = vld [vmem:[%s281_s15 + $0x14] ss:$8 sps:$4 sm:$0xff]   ;;  %s1038_s25 = scalar_lea.vmem %s1127_s2, %s761_s16  ;;  %p850_p0 = pneg %p849_p13 }
  0x1c   : > { %348 = vmatprep.subr.bf16.mxu0 %v822_v1  ;;  %v299_v4 = vld [vmem:[%s281_s15 + $0x20] sm:$0x11]  ;;  %v827_v6 = vld [vmem:[%s281_s15 + $0x10] ss:$8 sps:$4 sm:$0xff]   ;;  %s851_s12 = sshll.u32 %s928_s11, 4  ;;  %s852_s12 = int_to_ptr.vmem [resolvable:$false] %s851_s12 }
  0x1d   : > { %349 = vmatpush1.bf16.msra.mxu0 %v824_v2  ;;  %v741_v7 = vcombine.high %v299_v4, %v299_v4  ;;  %v740_v8 = vcombine.low %v299_v4, %v299_v4  ;;  %v831_v44 = vld [vmem:[%s1038_s25] sm:$0xff]   ;;  %v832_v45 = vld [vmem:[%s1038_s25 + $0x8] ss:$0 sps:$4 sm:$0x11]   ;;  %s757_s25 = sshll.u32 %s917_s21, 10  ;;  %s853_s13 = scalar_lea.vmem %s852_s12, 2048 }
  0x1e   : > { %350 = vmatprep.subr.bf16.mxu0 %v825_v3  ;;  %s1073_s8 = scalar_lea.hbm %s1130_s5, %s757_s25  ;;  %p854_p1 = scmp.lt.s32.totalorder %s1075_s29, %s852_s12 }
  0x1f   : > { %v346_v9 = vand.u32 %v741_v7, %v341_v5  ;;  %v343_v10 = vand.u32 %v740_v8, %v341_v5  ;;  %v833_v7 = vld [vmem:[%s1128_s3] sm:$0xff]   ;;  %v834_v8 = vld [vmem:[%s1128_s3 + $0x8] sm:$0xff]   ;;  %p855_p2 = scmp.lt.s32.totalorder %s853_s13, %s847_s10 }
  0x21   : > { %351 = vmatpush1.bf16.msra.mxu0 %v827_v6  ;;  %p856_p3 = por %p855_p2, %p854_p1 }
  0x22   : > { %352 = vmatprep.subr.bf16.mxu0 %v346_v9 }
  0x23   : > { %p857_p5 = pnand %p856_p3, %p850_p0 }
  0x25   : > { %353 = vmatpush1.bf16.msra.mxu0 %v343_v10 }
  0x28   : > { %742 = vmatmul.mubr.msk.bf16.vlgmr.msra.gmra.mrb[0].mxu0 %vm335_vm1, %v830_v11 }
  0x29   : > { %577 = vmatprep.mubr.bf16.mxu0 %v927_v0 }
  0x90   : > { %v522_v9 = vpop.permute.xlu1 %521  ;;  %v512_v10 = vpop.permute.xlu0 %511 }
  0x94   : > { %v527_v11 = vpop.permute.xlu1 %526 }
  0xfb   : > { %v382_v12 = vpop.f32.mrb[0].mxu0 }
  0xfc   : > { %v384_v13 = vpop.f32.mrb[1].mxu0 }
  0xfd   : > { %v386_v14 = vpop.f32.mrb[2].mxu0 }
  0xfe   : > { %v391_v15 = vmax.f32 %v382_v12, %v386_v14  ;;  %v388_v16 = vpop.f32.mrb[3].mxu0 }
  0xff   : > { %v398_v17 = vmax.f32 %v384_v13, %v388_v16 }
 0x100   : > { %v392_v18 = vrot.slane %v391_v15, 4 }
 0x101   : > { %v399_v19 = vrot.slane %v398_v17, 4 }
 0x102   : > { %v393_v20 = vmax.f32 %v391_v15, %v392_v18 }
 0x103   : > { %v400_v21 = vmax.f32 %v398_v17, %v399_v19 }
 0x104   : > { %v394_v22 = vrot.slane %v393_v20, 2 }
 0x105   : > { %v401_v23 = vrot.slane %v400_v21, 2 }
 0x106   : > { %v395_v24 = vmax.f32 %v393_v20, %v394_v22 }
 0x107   : > { %v402_v25 = vmax.f32 %v400_v21, %v401_v23 }
 0x108   : > { %v396_v26 = vrot.slane %v395_v24, 1 }
 0x109   : > { %v403_v27 = vrot.slane %v402_v25, 1 }
 0x10a   : > { %v397_v28 = vmax.f32 %v395_v24, %v396_v26 }
 0x10b   : > { %v404_v29 = vmax.f32 %v402_v25, %v403_v27 }
 0x10c   : > { %v405_v30 = vsub.f32 %v382_v12, %v397_v28  ;;  %v407_v31 = vsub.f32 %v386_v14, %v397_v28  ;;  %v517_v12 = vpop.permute.xlu0 %516 }
 0x10d   : > { %v406_v32 = vsub.f32 %v384_v13, %v404_v29  ;;  %v408_v33 = vsub.f32 %v388_v16, %v404_v29 }
 0x10e   : > { %v409_v34 = vmul.f32 1.442695, %v405_v30  ;;  %v413_v35 = vmul.f32 1.442695, %v407_v31 }
 0x10f   : > { %v411_v36 = vmul.f32 1.442695, %v406_v32  ;;  %v415_v37 = vmul.f32 1.442695, %v408_v33 }
 0x110   : > { %835 = vpow2.f32 %v409_v34 }
 0x111   : > { %837 = vpow2.f32 %v413_v35 }
 0x112   : > { %839 = vpow2.f32 %v411_v36 }
 0x113   : > { %841 = vpow2.f32 %v415_v37 }
 0x11a   : > { %v836_v38 = vpop.eup %835 }
 0x11b   : > { %v838_v39 = vpop.eup %837 }
 0x11c   : > { %v840_v40 = vpop.eup %839  ;;  %v417_v41 = vpack.c.bf16 %v838_v39, %v836_v38 }
 0x11d   : > { %v842_v42 = vpop.eup %841 }
 0x11e   : > { %v418_v43 = vpack.c.bf16 %v842_v42, %v840_v40 }
 0x120   : > { %434 = vmatprep.subr.bf16.mxu1 %v418_v43 }
 0x121   : > { %435 = vmatpush1.bf16.msra.mxu1 %v417_v41 }
 0x124   : > { %745 = vmatmul.mubr.msk.bf16.vlgmr.msra.gmra.mrb[0].mxu1 %vm427_vm2, %v831_v44 }
 0x125   : > { %476 = vmatprep.mubr.bf16.mxu1 %v927_v0 }
 0x12c   : > { %746 = vmatmul.mubr.msk.bf16.gmra.mrb[4].mxu1 %vm427_vm2, %v832_v45 }
 0x12d   : > { %587 = vmatprep.mubr.bf16.mxu1 %v927_v0 }
 0x1f7   : > { %v468_v50 = vpop.f32.mrb[0].mxu1 }
 0x1f8   : > { %v470_v51 = vpop.f32.mrb[1].mxu1 }
 0x1f9   : > { %v472_v52 = vpop.f32.mrb[2].mxu1 }
 0x1fa   : > { %v474_v53 = vpop.f32.mrb[3].mxu1 }
 0x1ff   : > { %v478_v54 = vpop.f32.mrb[4].mxu1 }
 0x200   : > { %843 = vrcp.f32 %v478_v54  ;;  %v480_v56 = vpop.f32.mrb[5].mxu1 }
 0x201   : > { %845 = vrcp.f32 %v480_v56  ;;  %v482_v57 = vpop.f32.mrb[6].mxu1 }
 0x202   : > { %v483_v58 = vpop.f32.mrb[7].mxu1 }
 0x20a   : > { %v844_v61 = vpop.eup %843 }
 0x20b   : > { %v846_v62 = vpop.eup %845  ;;  %v490_v63 = vrot.slane %v844_v61, %v489_v60 }
 0x20c   : > { %v494_v0 = vrot.slane %v846_v62, %v489_v60 }
 0x20d   : > { %v495_v1 = vmul.f32 %v490_v63, %v468_v50  ;;  %v497_v2 = vmul.f32 %v490_v63, %v472_v52 }
 0x20e   : > { %v496_v3 = vmul.f32 %v494_v0, %v470_v51  ;;  %v498_v4 = vmul.f32 %v494_v0, %v474_v53 }
 0x20f   : > { %v503_v5 = vpack.c.bf16 %v497_v2, %v495_v1 }
 0x210   : > { %v504_v6 = vpack.c.bf16 %v498_v4, %v496_v3 }
 0x212   : > { %545 = vmatprep.subr.bf16.mxu0 %v504_v6  ;;  %758 = vmatprep.subr.bf16.mxu1 %v504_v6 }
 0x213   : > { %546 = vmatpush1.bf16.msra.mxu0 %v503_v5  ;;  %759 = vmatpush1.bf16.msra.mxu1 %v503_v5 }
 0x216   : > { %749 = vmatmul.mubr.msk.bf16.vlgmr.msra.gmra.mrb[4].mxu0 %vm427_vm2, %v833_v7  ;;  %750 = vmatmul.mubr.msk.bf16.vlgmr.msra.gmra.mrb[8].mxu1 %vm427_vm2, %v834_v8 }
 0x2e9   : > { %v579_v13 = vpop.f32.mrb[4].mxu0  ;;  %v589_v14 = vpop.f32.mrb[8].mxu1 }
 0x2ea   : > { %v580_v15 = vadd.f32 %v579_v13, %v512_v10  ;;  %v590_v16 = vadd.f32 %v589_v14, %v522_v9  ;;  %v581_v17 = vpop.f32.mrb[5].mxu0  ;;  %v591_v18 = vpop.f32.mrb[9].mxu1 }
 0x2eb   : > { %v582_v19 = vadd.f32 %v581_v17, %v512_v10  ;;  %v592_v20 = vadd.f32 %v591_v18, %v522_v9  ;;  %v583_v21 = vpop.f32.mrb[6].mxu0  ;;  %v593_v22 = vpop.f32.mrb[10].mxu1 }
 0x2ec   : > { %598 = vst [vmem:[%s272_s27] sm:$0xff] %v580_v15  ;;  %602 = vst [vmem:[%s272_s27 + $0x20] sm:$0xff] %v590_v16  ;;  %v594_v23 = vadd.f32 %v593_v22, %v527_v11  ;;  %v584_v24 = vadd.f32 %v583_v21, %v517_v12  ;;  %v585_v25 = vpop.f32.mrb[7].mxu0  ;;  %v595_v26 = vpop.f32.mrb[11].mxu1 }
 0x2ed   : > { %599 = vst [vmem:[%s272_s27 + $0x8] sm:$0xff] %v582_v19  ;;  %603 = vst [vmem:[%s272_s27 + $0x28] sm:$0xff] %v592_v20  ;;  %v586_v27 = vadd.f32 %v585_v25, %v517_v12  ;;  %v596_v28 = vadd.f32 %v595_v26, %v527_v11 }
 0x2ee   : > { %604 = vst [vmem:[%s272_s27 + $0x30] sm:$0xff] %v594_v23  ;;  %600 = vst [vmem:[%s272_s27 + $0x10] sm:$0xff] %v584_v24 }
 0x2ef   : > { %601 = vst [vmem:[%s272_s27 + $0x18] sm:$0xff] %v586_v27  ;;  %605 = vst [vmem:[%s272_s27 + $0x38] sm:$0xff] %v596_v28 }
 0x2f0   : > { %860 = shalt.err (!%p857_p5)
}
 0x2f1   : > { %s861_s14 = scalar_lea.hbm %s1073_s8, 1024  ;;  %s865_s17 = scalar_lea.hbm %s1130_s5, 2048 }
 0x2f2   : > { %p862_p6 = scmp.ne.s32.totalorder %s1073_s8, %s861_s14  ;;  %p866_p10 = scmp.lt.u32.totalorder %s1073_s8, %s1130_s5 }
 0x2f3   : > { %p867_p11 = scmp.lt.u32.totalorder %s865_s17, %s861_s14  ;;  %p869_p13 = scmp.lt.u32.totalorder %s861_s14, %s1073_s8 }
 0x2f4   : > { %p863_p7 = pnand %p862_p6, %p1001_p4 }
 0x2f5   : > { %p868_p12 = por %p867_p11, %p866_p10 }
 0x2f6   : > { %p864_p9 = pneg %p863_p7 }
 0x2f7   : > { %p870_p0 = por %p869_p13, %p868_p12 }
 0x2f9   : > { %p871_p1 = pnand %p870_p0, %p864_p9 }
 0x2fb   : > { %874 = shalt.err (!%p871_p1)
}
 0x2fc   : > { %s929_s27 = smov 256   ;;  %s930_s7 = smov 16  }
 0x2fd   : > { %762 = dma.vmem_to_hbm [thread:$0]  (%p1001_p4), %s1075_s29, 1024, %s1073_s8, %s1079_s9, %s929_s27, %s929_s27, %s930_s7  }
 0x2fe PF: > { %p768_p2 = scmp.ge.s32.totalorder %s925_s23, 2  ;;  %s637_s21 = sand.u32 1, %s905_s18  }
 0x2ff   : > { %s638_s10 = scalar_lea.sflag [#allocation3], %s637_s21 }
 0x300   : > { %p765_p3 = pnand %p768_p2, %p1008_p8 }
 0x302   : > { %900 = dma.done.wait (!%p765_p3), %s638_s10, 1024  }
 0x303   : > { %902 = vsyncadd (!%p765_p3), %s638_s10, 4294966272  ;;  %s18_s23 = sadd.s32 1, %s925_s23   ;;  %s1133_s18 = smov %s909_s19 }
 0x304   : > { %p15_p5 = scmp.ge.s32.totalorder %s18_s23, 4   ;;  %s1134_s19 = smov %s913_s20 }
 0x305   : > { %s1135_s20 = smov %s1014_s6  ;;  %s1136_s21 = smov %s921_s22 }
 0x306   : > { %s1137_s22 = smov %s1139_s26  ;;  %17 = sbr.rel (!%p15_p5) target bundleno = 4 (0x4), region = 81 }
 0x30d   :  { %643 = vsyncpa [#allocation3], 1 }
 0x30e   :  { %645 = vsyncpa [#allocation3 + $0x1], 1 }

</bundles_post_ra>
